<compile_context>
chip_gen: v6e
topology: v6e:2x2x1
jax: 0.10.0
libtpu: 0.0.40
codegen_flags: <defaults>
</compile_context>

<pallas_src>
import math

import jax
import jax.numpy as jnp
from jax.experimental import pallas as pl
from jax.experimental.pallas import tpu as pltpu


def _sinu_embed_kernel(scale_ref, freq_ref, phase_ref, sinb_ref, cosb_ref, out_ref):
    # scale_ref: SMEM (1,)          f32   learned scalar
    # freq_ref : VMEM (1, L)        f32   per-lane angular frequency (k folded in)
    # phase_ref: VMEM (1, L)        f32   per-lane phase (cos half + group offset)
    # sinb_ref : VMEM (tile_r, L)   f32   sin(r * freq'), r = row within tile
    # cosb_ref : VMEM (tile_r, L)   f32   cos(r * freq')
    # out_ref  : VMEM (tile_r, L)   f32
    tile_r = out_ref.shape[0]
    tile_base = (pl.program_id(0) * tile_r).astype(jnp.float32)

    # Per-lane angle offset for this tile: A = tile_base*freq' + phase'.
    a = tile_base * freq_ref[...] + phase_ref[...]                 # (1, L)
    s = scale_ref[0]
    half_pi = jnp.float32(jnp.pi / 2)
    sin_a = jnp.sin(a) * s                                         # (1, L)
    cos_a = jnp.sin(a + half_pi) * s                               # cos(A)*scale

    # sin(A + B) * scale = sinA*cosB + cosA*sinB  -> 2 vmul + 1 vadd / element.
    out_ref[...] = sin_a * cosb_ref[...] + cos_a * sinb_ref[...]


def scaled_sinu_embedding(x, scale, inv_freq):
    """x: (B, N, D). Returns the (N, D) positional embedding (as in PyTorch)."""
    _, n, dim = x.shape
    assert dim % 2 == 0
    half = dim // 2
    assert inv_freq.shape == (half,)

    # Lane packing: k consecutive positions per slab row so the stored last dim
    # is lcm(dim, 128) — a multiple of 128 → unmasked full-width stores.
    lanes = math.lcm(dim, 128)
    k = lanes // dim

    # Per-lane coefficients with the k-group offset folded in:
    #   lane l = grp*dim + d,  pos = row*k + grp
    #   angle  = pos*freq[d] + phase[d]
    #          = row*(k*freq[d]) + (phase[d] + grp*freq[d]) = row*freq'[l] + phase'[l]
    inv_freq = inv_freq.astype(jnp.float32)
    freq_row = jnp.concatenate([inv_freq, inv_freq])                         # (dim,)
    phase_row = jnp.concatenate(
        [jnp.zeros((half,), jnp.float32),
         jnp.full((half,), jnp.pi / 2, dtype=jnp.float32)])                  # cos = sin(x+pi/2)
    freq_rep = jnp.tile(freq_row, (k,))                                      # (lanes,)
    grp = jnp.arange(lanes, dtype=jnp.float32) // dim                        # (lanes,)
    freq_l = (freq_rep * float(k)).reshape(1, lanes)
    phase_l = (jnp.tile(phase_row, (k,)) + grp * freq_rep).reshape(1, lanes)
    scale_1d = jnp.asarray(scale, jnp.float32).reshape(1)

    # Sequence tiling over packed rows: ~6 MiB output tiles (store-bound kernel,
    # amortize per-step overhead), rows a multiple of 8, and >= 2 grid steps
    # when possible so v7x's two TensorCores both get work.
    rows = pl.cdiv(n, k)
    target_rows = max(8, ((6 << 20) // (lanes * 4)) // 8 * 8)
    half_rows = pl.cdiv(pl.cdiv(rows, 2), 8) * 8
    tile_r = max(8, min(target_rows, half_rows))
    num_tiles = pl.cdiv(rows, tile_r)
    rows_padded = num_tiles * tile_r

    # Row-within-tile sin/cos tables, identical for every grid step -> passed
    # as whole-array VMEM inputs (single copy, reused by all steps).
    r = jnp.arange(tile_r, dtype=jnp.float32).reshape(tile_r, 1)
    b = r * freq_l                                                           # (tile_r, lanes)
    sin_b = jnp.sin(b)
    cos_b = jnp.cos(b)

    slab = pl.pallas_call(
        _sinu_embed_kernel,
        out_shape=jax.ShapeDtypeStruct((rows_padded, lanes), jnp.float32),
        grid=(num_tiles,),
        in_specs=[
            pl.BlockSpec(memory_space=pltpu.SMEM),   # scale (1,)
            pl.BlockSpec(memory_space=pltpu.VMEM),   # freq'  (1, lanes)
            pl.BlockSpec(memory_space=pltpu.VMEM),   # phase' (1, lanes)
            pl.BlockSpec(memory_space=pltpu.VMEM),   # sin(B) table (tile_r, lanes)
            pl.BlockSpec(memory_space=pltpu.VMEM),   # cos(B) table (tile_r, lanes)
        ],
        out_specs=pl.BlockSpec((tile_r, lanes), lambda i: (i, 0)),
        compiler_params=pltpu.CompilerParams(
            dimension_semantics=("parallel",),
            vmem_limit_bytes=48 << 20),
    )(scale_1d, freq_l, phase_l, sin_b, cos_b)

    # Contiguous (free) reshape back to (positions, dim); drop row padding.
    return slab.reshape(rows_padded * k, dim)[:n]


def reference(x, scale, inv_freq):
    n = x.shape[1]
    t = jnp.arange(n, dtype=jnp.float32)
    sinu = t[:, None] * inv_freq[None, :]
    emb = jnp.concatenate([jnp.sin(sinu), jnp.cos(sinu)], axis=-1)
    return emb * scale


if __name__ == "__main__":
    key = jax.random.PRNGKey(0)

    # Test 1: small shape matching the module: (batch=2, seq=8, dim=32).
    B, N, D = 2, 8, 32
    x = jax.random.normal(key, (B, N, D), dtype=jnp.float32)
    scale = jnp.ones((1,), dtype=jnp.float32)
    inv_freq = 1.0 / (10000.0 ** (jnp.arange(0, D, 2, dtype=jnp.float32) / D))
    out = jax.block_until_ready(scaled_sinu_embedding(x, scale, inv_freq))
    ref = reference(x, scale, inv_freq)
    assert out.shape == (N, D)
    assert jnp.allclose(out, ref, atol=1e-5, rtol=1e-5), "mismatch vs reference"

    # Test 2: lane packing (k=2), multi-step grid, row padding/slicing.
    B2, N2, D2 = 2, 120, 64
    x2 = jax.random.normal(key, (B2, N2, D2), dtype=jnp.float32)
    scale2 = jnp.full((1,), 0.5, dtype=jnp.float32)
    inv_freq2 = 1.0 / (10000.0 ** (jnp.arange(0, D2, 2, dtype=jnp.float32) / D2))
    out2 = jax.block_until_ready(scaled_sinu_embedding(x2, scale2, inv_freq2))
    ref2 = reference(x2, scale2, inv_freq2)
    assert out2.shape == (N2, D2)
    assert jnp.allclose(out2, ref2, atol=3e-5, rtol=1e-5), "mismatch (packed/padded)"

    # Test 3: dim that neither divides nor is a multiple of 128 (lcm packing, k=4).
    B3, N3, D3 = 2, 100, 96
    x3 = jax.random.normal(key, (B3, N3, D3), dtype=jnp.float32)
    scale3 = jnp.full((1,), 1.7, dtype=jnp.float32)
    inv_freq3 = 1.0 / (10000.0 ** (jnp.arange(0, D3, 2, dtype=jnp.float32) / D3))
    out3 = jax.block_until_ready(scaled_sinu_embedding(x3, scale3, inv_freq3))
    ref3 = reference(x3, scale3, inv_freq3)
    assert out3.shape == (N3, D3)
    assert jnp.allclose(out3, ref3, atol=3e-5, rtol=1e-5), "mismatch (lcm packing)"

    print("KERNEL_OK")
</pallas_src>

<mosaic_0001>
module attributes {stable_mosaic.version = 11 : i64} {
  func.func @_sinu_embed_kernel(%arg0: i32, %arg1: memref<1xf32, #tpu.memory_space<smem>>, %arg2: memref<1x128xf32, #tpu.memory_space<vmem>>, %arg3: memref<1x128xf32, #tpu.memory_space<vmem>>, %arg4: memref<8x128xf32, #tpu.memory_space<vmem>>, %arg5: memref<8x128xf32, #tpu.memory_space<vmem>>, %arg6: memref<8x128xf32, #tpu.memory_space<vmem>>) attributes {dimension_semantics = [#tpu.dimension_semantics<parallel>], iteration_bounds = array<i64: 1>, scalar_prefetch = 0 : i64, scratch_operands = 0 : i64, tpu.core_type = #tpu.core_type<tc>, window_params = [{transform_indices = @transform_0, window_bounds = array<i64: 1>}, {pipeline_mode = #tpu.pipeline_mode<synchronous>, transform_indices = @transform_1, window_bounds = array<i64: 1, 128>}, {pipeline_mode = #tpu.pipeline_mode<synchronous>, transform_indices = @transform_2, window_bounds = array<i64: 1, 128>}, {pipeline_mode = #tpu.pipeline_mode<synchronous>, transform_indices = @transform_3, window_bounds = array<i64: 8, 128>}, {pipeline_mode = #tpu.pipeline_mode<synchronous>, transform_indices = @transform_4, window_bounds = array<i64: 8, 128>}, {transform_indices = @transform_5, window_bounds = array<i64: 8, 128>}]} {
    %c8_i32 = arith.constant 8 : i32
    %0 = arith.muli %arg0, %c8_i32 : i32
    %1 = arith.sitofp %0 : i32 to f32
    %c0 = arith.constant 0 : index
    %c0_0 = arith.constant 0 : index
    %2 = vector.load %arg2[%c0, %c0_0] : memref<1x128xf32, #tpu.memory_space<vmem>>, vector<1x128xf32>
    %3 = vector.broadcast %1 : f32 to vector<1x128xf32>
    %4 = arith.mulf %3, %2 : vector<1x128xf32>
    %c0_1 = arith.constant 0 : index
    %c0_2 = arith.constant 0 : index
    %5 = vector.load %arg3[%c0_1, %c0_2] : memref<1x128xf32, #tpu.memory_space<vmem>>, vector<1x128xf32>
    %6 = arith.addf %4, %5 : vector<1x128xf32>
    %c0_3 = arith.constant 0 : index
    %7 = memref.load %arg1[%c0_3] : memref<1xf32, #tpu.memory_space<smem>>
    %8 = math.sin %6 : vector<1x128xf32>
    %9 = vector.broadcast %7 : f32 to vector<1x128xf32>
    %10 = arith.mulf %8, %9 : vector<1x128xf32>
    %cst = arith.constant 1.57079637 : f32
    %11 = vector.broadcast %cst : f32 to vector<1x128xf32>
    %12 = arith.addf %6, %11 : vector<1x128xf32>
    %13 = math.sin %12 : vector<1x128xf32>
    %14 = vector.broadcast %7 : f32 to vector<1x128xf32>
    %15 = arith.mulf %13, %14 : vector<1x128xf32>
    %c0_4 = arith.constant 0 : index
    %c0_5 = arith.constant 0 : index
    %16 = vector.load %arg5[%c0_4, %c0_5] : memref<8x128xf32, #tpu.memory_space<vmem>>, vector<8x128xf32>
    %17 = vector.broadcast %10 : vector<1x128xf32> to vector<8x128xf32>
    %18 = arith.mulf %17, %16 : vector<8x128xf32>
    %c0_6 = arith.constant 0 : index
    %c0_7 = arith.constant 0 : index
    %19 = vector.load %arg4[%c0_6, %c0_7] : memref<8x128xf32, #tpu.memory_space<vmem>>, vector<8x128xf32>
    %20 = vector.broadcast %15 : vector<1x128xf32> to vector<8x128xf32>
    %21 = arith.mulf %20, %19 : vector<8x128xf32>
    %22 = arith.addf %18, %21 : vector<8x128xf32>
    %c0_8 = arith.constant 0 : index
    %c0_9 = arith.constant 0 : index
    %23 = vector.load %arg6[%c0_8, %c0_9] : memref<8x128xf32, #tpu.memory_space<vmem>>, vector<8x128xf32>
    tpu.vector_store %arg6[%c0_8, %c0_9], %22 {strides = array<i32>} : memref<8x128xf32, #tpu.memory_space<vmem>>, vector<8x128xf32>,
    return
  }
  func.func @transform_0(%arg0: i32) -> i32 {
    %c0_i32 = arith.constant 0 : i32
    %c0_i32_0 = arith.constant 0 : i32
    return %c0_i32 : i32
  }
  func.func @transform_1(%arg0: i32) -> (i32, i32) {
    %c0_i32 = arith.constant 0 : i32
    %c0_i32_0 = arith.constant 0 : i32
    %c0_i32_1 = arith.constant 0 : i32
    return %c0_i32, %c0_i32_0 : i32, i32
  }
  func.func @transform_2(%arg0: i32) -> (i32, i32) {
    %c0_i32 = arith.constant 0 : i32
    %c0_i32_0 = arith.constant 0 : i32
    %c0_i32_1 = arith.constant 0 : i32
    return %c0_i32, %c0_i32_0 : i32, i32
  }
  func.func @transform_3(%arg0: i32) -> (i32, i32) {
    %c0_i32 = arith.constant 0 : i32
    %c0_i32_0 = arith.constant 0 : i32
    %c0_i32_1 = arith.constant 0 : i32
    return %c0_i32, %c0_i32_0 : i32, i32
  }
  func.func @transform_4(%arg0: i32) -> (i32, i32) {
    %c0_i32 = arith.constant 0 : i32
    %c0_i32_0 = arith.constant 0 : i32
    %c0_i32_1 = arith.constant 0 : i32
    return %c0_i32, %c0_i32_0 : i32, i32
  }
  func.func @transform_5(%arg0: i32) -> (i32, i32) {
    %c0_i32 = arith.constant 0 : i32
    %c0_i32_0 = arith.constant 0 : i32
    return %arg0, %c0_i32 : i32, i32
  }
}

</mosaic_0001>

<bundles_post_ra>
// kernel: tpu_custom_call.1
= control target key start
LH: loop header
LB: loop body
LE: loop exit
PB: predicated region body
PF: predicated region fallthrough
CT: control target
= control target key end

     0   :  { %11 = vsyncpa [#allocation4], 0  ;;  %s533_s0 = inlined_call_operand.<no memory space> [shape: f32[1], index: 0, kind: input, shape index: {}]   ;;  %s534_s1 = inlined_call_operand.vmem [shape: f32[1,128], index: 1, kind: input, shape index: {}]   ;;  %s535_s2 = inlined_call_operand.vmem [shape: f32[1,128], index: 2, kind: input, shape index: {}]   ;;  %s536_s3 = inlined_call_operand.hbm [shape: f32[8,128], index: 3, kind: input, shape index: {}]   ;;  %s537_s4 = inlined_call_operand.hbm [shape: f32[8,128], index: 4, kind: input, shape index: {}]   ;;  %s538_s5 = inlined_call_operand.hbm [shape: f32[8,128], index: 5, kind: output, shape index: {}]  }
   0x1   :  { %12 = vsyncpa [#allocation7], 0 }
   0x2   :  { %13 = vsyncpa [#allocation5], 0  ;;  %s399_s18 = smov [#allocation3]   ;;  %s400_s20 = smov [#allocation6]  }
   0x3   :  { %s26_s19 = sshll.u32 %s399_s18, 4  ;;  %s36_s21 = sshll.u32 %s400_s20, 4  ;;  %s27_s19 = int_to_ptr.vmem [resolvable:$true] %s26_s19  ;;  %s37_s21 = int_to_ptr.vmem [resolvable:$true] %s36_s21 }
   0x4   :  { %s341_s22 = scalar_lea.vmem %s27_s19, 128  ;;  %p346_p1 = scmp.lt.s32.totalorder %s27_s19, %s27_s19 }
   0x5   :  { %p342_p0 = scmp.ne.s32.totalorder %s27_s19, %s341_s22  ;;  %p347_p2 = scmp.lt.s32.totalorder %s341_s22, %s341_s22 }
   0x7   :  { %p348_p3 = por %p347_p2, %p346_p1 }
   0x9   :  { %p349_p4 = pnand %p348_p3, %p342_p0 }
   0xb   :  { %352 = shalt.err (!%p349_p4)
}
   0xc   :  { %29 = dma.hbm_to_vmem [thread:$0]  %s536_s3, 128, %s27_s19, [#allocation4]  }
   0xd   :  { %s361_s25 = scalar_lea.vmem %s37_s21, 128  ;;  %p366_p6 = scmp.lt.s32.totalorder %s37_s21, %s37_s21 }
   0xe   :  { %p362_p5 = scmp.ne.s32.totalorder %s37_s21, %s361_s25  ;;  %p367_p7 = scmp.lt.s32.totalorder %s361_s25, %s361_s25 }
  0x10   :  { %p368_p8 = por %p367_p7, %p366_p6 }
  0x12   :  { %p369_p9 = pnand %p368_p8, %p362_p5 }
  0x14   :  { %372 = shalt.err (!%p369_p9)
}
  0x15   :  { %39 = dma.hbm_to_vmem [thread:$0]  %s537_s4, 128, %s37_s21, [#allocation7]  }
  0x16   :  { %393 = dma.done.wait [#allocation4], 128  }
  0x17   :  { %394 = vsyncadd [#allocation4], 4294967168 }
  0x18   :  { %395 = dma.done.wait [#allocation7], 128  }
  0x19   :  { %396 = vsyncadd [#allocation7], 4294967168  ;;  %v48_v0 = vld [vmem:[%s534_s1] sm:$0x1]  ;;  %v401_v24 = vmov 683565275  }
  0x1a   :  { %v51_v1 = vld [vmem:[%s535_s2] sm:$0x1]  ;;  %v50_v2 = vmul.f32 0.0, %v48_v0  ;;  %v402_v26 = vmov 2475754826  }
  0x1b   :  { %v403_v28 = vmov 2131351028   ;;  %v404_v30 = vmov 2102212464   ;;  %v405_v32 = vmov 920167782  }
  0x1c   :  { %v450_v3 = vadd.f32 %v51_v1, %v50_v2  ;;  %v406_v39 = vmov 1326507024  }
  0x1e   :  { %v54_v4 = vand.u32 2147483647, %v450_v3  ;;  %v57_v5 = vand.u32 2139095040, %v450_v3  ;;  %v455_v6 = vadd.f32 1.5707964, %v450_v3  ;;  %vm56_vm14 = vcmp.lt.s32.totalorder %v450_v3, 0 }
  0x20   :  { %v58_v7 = vshrl.u32 %v57_v5, 23  ;;  %v61_v8 = vand.u32 8388607, %v54_v4  ;;  %v161_v9 = vand.u32 2147483647, %v455_v6  ;;  %v164_v10 = vand.u32 2139095040, %v455_v6 }
  0x21   :  { %vm55_vm15 = vcmp.le.f32.partialorder %v54_v4, 0.7853982 }
  0x22   :  { %v300_v11 = vadd.s32 4294967169, %v58_v7  ;;  %v165_v12 = vshrl.u32 %v164_v10, 23  ;;  %v62_v14 = vor.u32 8388608, %v61_v8  ;;  %v463_v16 = vand.u32 8388607, %v161_v9 }
  0x24   :  { %v64_v13 = vadd.s32 1, %v300_v11  ;;  %v304_v15 = vadd.s32 4294967169, %v165_v12  ;;  %v465_v21 = vshll.u32 %v62_v14, 8  ;;  %v169_v22 = vor.u32 8388608, %v463_v16 }
  0x26   :  { %vm65_vm0 = vcmp.gt.s32.totalorder %v64_v13, 0  ;;  %v171_v18 = vadd.s32 1, %v304_v15 }
  0x27   :  { %v66_v17 = vsel %vm65_vm0, %v64_v13, 0  ;;  %vm163_vm0 = vcmp.lt.s32.totalorder %v455_v6, 0 }
  0x28   :  { %v67_v19 = vshrl.u32 %v66_v17, 5  ;;  %v68_v20 = vand.u32 31, %v66_v17  ;;  %vm172_vm1 = vcmp.gt.s32.totalorder %v171_v18, 0 }
  0x29   :  { %v173_v44 = vsel %vm172_vm1, %v171_v18, 0  ;;  %vm516_vm1 = vcmp.le.f32.partialorder %v161_v9, 0.7853982 }
  0x2a   :  { %v69_v23 = vsub.s32 32, %v68_v20  ;;  %v71_v25 = vshll.u32 %v401_v24, %v68_v20  ;;  %v74_v27 = vshll.u32 %v402_v26, %v68_v20  ;;  %v77_v29 = vshll.u32 %v403_v28, %v68_v20 }
  0x2b   :  { %v80_v31 = vshll.u32 %v404_v30, %v68_v20  ;;  %v83_v33 = vshll.u32 %v405_v32, %v68_v20  ;;  %vm86_vm2 = vcmp.lt.s32.totalorder %v67_v19, 1  ;;  %vm87_vm3 = vcmp.lt.s32.totalorder %v67_v19, 2 }
  0x2c   :  { %v70_v34 = vshrl.u32 %v401_v24, %v69_v23  ;;  %v72_v35 = vshrl.u32 %v402_v26, %v69_v23  ;;  %v75_v36 = vshrl.u32 %v403_v28, %v69_v23  ;;  %v78_v37 = vshrl.u32 %v404_v30, %v69_v23 }
  0x2d   :  { %v81_v38 = vshrl.u32 %v405_v32, %v69_v23  ;;  %v84_v40 = vshrl.u32 %v406_v39, %v69_v23  ;;  %vm88_vm4 = vcmp.lt.s32.totalorder %v67_v19, 3  ;;  %vm89_vm5 = vcmp.lt.s32.totalorder %v67_v19, 4 }
  0x2e   :  { %v73_v41 = vor.u32 %v72_v35, %v71_v25  ;;  %v76_v42 = vor.u32 %v75_v36, %v74_v27  ;;  %v79_v43 = vor.u32 %v78_v37, %v77_v29  ;;  %v174_v47 = vshrl.u32 %v173_v44, 5 }
  0x2f   :  { %v82_v45 = vor.u32 %v81_v38, %v80_v31  ;;  %v85_v46 = vor.u32 %v84_v40, %v83_v33  ;;  %v175_v48 = vand.u32 31, %v173_v44 }
  0x30   :  { %v90_v49 = vsel %vm86_vm2, %v70_v34, %v73_v41  ;;  %v91_v50 = vsel %vm89_vm5, %v79_v43, 2102212464  ;;  %v94_v51 = vsel %vm86_vm2, %v73_v41, %v76_v42  ;;  %v98_v52 = vsel %vm86_vm2, %v76_v42, %v79_v43 }
  0x31   :  { %v92_v53 = vsel %vm88_vm4, %v76_v42, %v91_v50  ;;  %v95_v54 = vsel %vm89_vm5, %v82_v45, 920167782  ;;  %v99_v55 = vsel %vm89_vm5, %v85_v46, 1326507024  ;;  %v176_v56 = vsub.s32 32, %v175_v48 }
  0x32   :  { %v93_v57 = vsel %vm87_vm3, %v90_v49, %v92_v53  ;;  %v96_v58 = vsel %vm88_vm4, %v79_v43, %v95_v54  ;;  %v100_v59 = vsel %vm88_vm4, %v82_v45, %v99_v55  ;;  %v178_v60 = vshll.u32 %v401_v24, %v175_v48 }
  0x33   :  { %v97_v61 = vsel %vm87_vm3, %v94_v51, %v96_v58  ;;  %v101_v62 = vsel %vm87_vm3, %v98_v52, %v100_v59  ;;  %v109_v63 = vmul.u32 %v465_v21, %v93_v57  ;;  %v177_v0 = vshrl.u32 %v401_v24, %v176_v56 }
  0x34   :  { %v480_v1 = vmul.u32.u64.low %v465_v21, %v101_v62  ;;  %v481_v2 = vmul.u32.u64.high %v465_v21, %v101_v62, %v480_v1  ;;  %v484_v5 = vmul.u32.u64.low %v465_v21, %v97_v61  ;;  %v485_v7 = vmul.u32.u64.high %v465_v21, %v97_v61, %v484_v5 }
  0x35   :  { %v179_v8 = vshrl.u32 %v402_v26, %v176_v56  ;;  %v181_v10 = vshll.u32 %v402_v26, %v175_v48  ;;  %v182_v11 = vshrl.u32 %v403_v28, %v176_v56  ;;  %v184_v12 = vshll.u32 %v403_v28, %v175_v48 }
  0x36   :  { %v185_v13 = vshrl.u32 %v404_v30, %v176_v56  ;;  %v187_v14 = vshll.u32 %v404_v30, %v175_v48  ;;  %v188_v15 = vshrl.u32 %v405_v32, %v176_v56  ;;  %v190_v17 = vshll.u32 %v405_v32, %v175_v48 }
  0x37   :  { %v180_v18 = vor.u32 %v179_v8, %v178_v60  ;;  %v183_v19 = vor.u32 %v182_v11, %v181_v10  ;;  %v191_v20 = vshrl.u32 %v406_v39, %v176_v56  ;;  %vm193_vm6 = vcmp.lt.s32.totalorder %v174_v47, 1 }
  0x38   :  { %vm111_vm7 = vc.u32 %v481_v2, %v484_v5  ;;  %v112_v23 = vadd.s32 1, %v485_v7  ;;  %v186_v24 = vor.u32 %v185_v13, %v184_v12  ;;  %v209_v21 = vshll.u32 %v169_v22, 8 }
  0x39   :  { %v189_v25 = vor.u32 %v188_v15, %v187_v14  ;;  %v192_v26 = vor.u32 %v191_v20, %v190_v17  ;;  %vm194_vm8 = vcmp.lt.s32.totalorder %v174_v47, 2  ;;  %vm195_vm9 = vcmp.lt.s32.totalorder %v174_v47, 3 }
  0x3a   :  { %v113_v27 = vsel %vm111_vm7, %v112_v23, %v485_v7  ;;  %vm196_vm10 = vcmp.lt.s32.totalorder %v174_v47, 4  ;;  %v197_v28 = vsel %vm193_vm6, %v177_v0, %v180_v18  ;;  %v201_v29 = vsel %vm193_vm6, %v180_v18, %v183_v19 }
  0x3b   :  { %v114_v30 = vadd.s32 %v113_v27, %v109_v63  ;;  %v198_v31 = vsel %vm196_vm10, %v186_v24, 2102212464  ;;  %v202_v32 = vsel %vm196_vm10, %v189_v25, 920167782  ;;  %v205_v33 = vsel %vm193_vm6, %v183_v19, %v186_v24 }
  0x3c   :  { %v199_v34 = vsel %vm195_vm9, %v183_v19, %v198_v31  ;;  %v203_v35 = vsel %vm195_vm9, %v186_v24, %v202_v32  ;;  %v206_v16 = vsel %vm196_vm10, %v192_v26, 1326507024  ;;  %v110_v58 = vadd.s32 %v484_v5, %v481_v2 }
  0x3d   :  { %v115_v22 = vadd.s32 536870912, %v114_v30  ;;  %v204_v36 = vsel %vm194_vm8, %v201_v29, %v203_v35  ;;  %v207_v37 = vsel %vm195_vm9, %v189_v25, %v206_v16  ;;  %v200_v38 = vsel %vm194_vm8, %v197_v28, %v199_v34 }
  0x3e   :  { %v208_v39 = vsel %vm194_vm8, %v205_v33, %v207_v37  ;;  %v498_v40 = vmul.u32.u64.low %v209_v21, %v204_v36  ;;  %v499_v41 = vmul.u32.u64.high %v209_v21, %v204_v36, %v498_v40  ;;  %v216_v46 = vmul.u32 %v209_v21, %v200_v38 }
  0x3f   :  { %v116_v42 = vshrl.u32 %v115_v22, 30  ;;  %v501_v43 = vmul.u32.u64.low %v209_v21, %v208_v39  ;;  %v502_v44 = vmul.u32.u64.high %v209_v21, %v208_v39, %v501_v43  ;;  %vm146_vm5 = vweird.f32 %v450_v3 }
  0x40   :  { %v219_v48 = vadd.s32 1, %v499_v41  ;;  %vm253_vm9 = vweird.f32 %v455_v6 }
  0x41   :  { %v117_v45 = vshll.u32 %v116_v42, 30  ;;  %vm218_vm11 = vc.u32 %v502_v44, %v498_v40  ;;  %v217_v18 = vadd.s32 %v498_v40, %v502_v44  ;;  %v140_v19 = vsub.s32 4, %v116_v42 }
  0x42   :  { %v220_v50 = vsel %vm218_vm11, %v219_v48, %v499_v41 }
  0x43   :  { %v118_v49 = vsub.s32 %v114_v30, %v117_v45  ;;  %v221_v52 = vadd.s32 %v220_v50, %v216_v46  ;;  %v141_v28 = vsel %vm56_vm14, %v140_v19, %v116_v42  ;;  %v268_v50 = vlaneseq }
  0x44   :  { %v143_v34 = vsel %vm55_vm15, 0, %v141_v28 }
  0x45   :  { %v120_v51 = vsub.s32 0, %v118_v49  ;;  %v222_v53 = vadd.s32 536870912, %v221_v52  ;;  %v147_v16 = vadd.s32 3, %v143_v34 }
  0x47   :  { %v301_v47 = vmin.u32 %v120_v51, %v118_v49  ;;  %v223_v55 = vshrl.u32 %v222_v53, 30  ;;  %v148_v38 = vand.u32 3, %v147_v16 }
  0x49   :  { %v122_v54 = vclz %v301_v47  ;;  %v224_v57 = vshll.u32 %v223_v55, 30  ;;  %v247_v4 = vsub.s32 4, %v223_v55  ;;  %vm153_vm2 = vcmp.eq.s32.totalorder %v148_v38, 2 }
  0x4a   :  { %vm150_vm3 = vcmp.eq.s32.totalorder %v148_v38, 0  ;;  %vm149_vm4 = vcmp.lt.s32.totalorder %v148_v38, 2  ;;  %v269_v47 = vshrl.u32 %v268_v50, 7 }
  0x4b   :  { %v302_v56 = vadd.s32 4294967294, %v122_v54  ;;  %v225_v60 = vsub.s32 %v221_v52, %v224_v57  ;;  %v248_v40 = vsel %vm163_vm0, %v247_v4, %v223_v55  ;;  %v158_v54 = vstv %s533_s0  ;;  %s407_s0 = smov [#allocation8]  }
  0x4c   :  { %v250_v43 = vsel %vm516_vm1, 0, %v248_v40  ;;  %s290_s4 = sshll.u32 %s407_s0, 4  ;;  %s291_s4 = int_to_ptr.vmem [resolvable:$true] %s290_s4 }
  0x4d   :  { %vm303_vm12 = vcmp.lt.s32.totalorder %v302_v56, 0  ;;  %v227_v0 = vsub.s32 0, %v225_v60  ;;  %v254_v48 = vadd.s32 3, %v250_v43  ;;  %s373_s6 = scalar_lea.vmem %s291_s4, 128  ;;  %p378_p11 = scmp.lt.s32.totalorder %s291_s4, %s291_s4 }
  0x4e   :  { %v125_v59 = vsel %vm303_vm12, 0, %v302_v56  ;;  %p374_p10 = scmp.ne.s32.totalorder %s291_s4, %s373_s6  ;;  %p379_p12 = scmp.lt.s32.totalorder %s373_s6, %s373_s6 }
  0x4f   :  { %v126_v61 = vsub.s32 32, %v125_v59  ;;  %v127_v62 = vshll.u32 %v118_v49, %v125_v59  ;;  %v130_v63 = vsub.s32 4294967266, %v125_v59  ;;  %v305_v8 = vmin.u32 %v227_v0, %v225_v60 }
  0x50   :  { %v255_v52 = vand.u32 3, %v254_v48  ;;  %v270_v59 = vsub.s32 0, %v269_v47  ;;  %p380_p13 = por %p379_p12, %p378_p11 }
  0x51   :  { %v128_v1 = vshrl.u32 %v110_v58, %v126_v61  ;;  %v131_v7 = vadd.s32 127, %v130_v63  ;;  %v229_v12 = vclz %v305_v8  ;;  %v274_v8 = vld [vmem:[#allocation3] sm:$0xff] }
  0x52   :  { %vm260_vm6 = vcmp.eq.s32.totalorder %v255_v52, 2  ;;  %vm257_vm7 = vcmp.eq.s32.totalorder %v255_v52, 0  ;;  %vm256_vm8 = vcmp.lt.s32.totalorder %v255_v52, 2  ;;  %p381_p0 = pnand %p380_p13, %p374_p10 }
  0x53   :  { %v129_v10 = vor.u32 %v128_v1, %v127_v62  ;;  %v132_v11 = vshll.u32 %v131_v7, 23  ;;  %v306_v15 = vadd.s32 4294967294, %v229_v12  ;;  %v266_v1 = vld [vmem:[#allocation6] sm:$0xff] }
  0x55   :  { %v133_v13 = vor.u32 4788187, %v132_v11  ;;  %v136_v14 = vcvt.s32.f32 %v129_v10  ;;  %vm307_vm13 = vcmp.lt.s32.totalorder %v306_v15, 0 }
  0x56   :  { %v232_v5 = vsel %vm307_vm13, 0, %v306_v15 }
  0x57   :  { %v134_v17 = vand.u32 2147483647, %v133_v13  ;;  %v233_v20 = vsub.s32 32, %v232_v5  ;;  %v234_v23 = vshll.u32 %v225_v60, %v232_v5  ;;  %v237_v24 = vsub.s32 4294967266, %v232_v5 }
  0x59   :  { %v137_v2 = vmul.f32 %v136_v14, %v134_v17  ;;  %v235_v25 = vshrl.u32 %v217_v18, %v233_v20  ;;  %v238_v26 = vadd.s32 127, %v237_v24 }
  0x5b   :  { %v138_v21 = vxor.u32 2147483648, %v137_v2  ;;  %v236_v30 = vor.u32 %v235_v25, %v234_v23  ;;  %v239_v31 = vshll.u32 %v238_v26, 23 }
  0x5d   :  { %v139_v27 = vsel %vm56_vm14, %v138_v21, %v137_v2  ;;  %v240_v32 = vor.u32 4788187, %v239_v31  ;;  %v243_v33 = vcvt.s32.f32 %v236_v30 }
  0x5e   :  { %v142_v29 = vsel %vm55_vm15, %v450_v3, %v139_v27 }
  0x5f   :  { %325 = vcosq.f32 %v142_v29  ;;  %v241_v35 = vand.u32 2147483647, %v240_v32 }
  0x60   :  { %327 = vsinq.f32 %v142_v29 }
  0x61   :  { %v244_v22 = vmul.f32 %v243_v33, %v241_v35 }
  0x63   :  { %v245_v37 = vxor.u32 2147483648, %v244_v22 }
  0x65   :  { %v246_v39 = vsel %vm163_vm0, %v245_v37, %v244_v22 }
  0x66   :  { %v249_v41 = vsel %vm516_vm1, %v455_v6, %v246_v39 }
  0x67   :  { %329 = vcosq.f32 %v249_v41 }
  0x68   :  { %331 = vsinq.f32 %v249_v41 }
  0x6c   :  { %v326_v42 = vpop.eup %325 }
  0x6d   :  { %v328_v44 = vpop.eup %327  ;;  %v154_v9 = vxor.u32 2147483648, %v326_v42 }
  0x6e   :  { %v151_v45 = vxor.u32 2147483648, %v328_v44 }
  0x6f   :  { %v155_v46 = vsel %vm153_vm2, %v154_v9, %v328_v44 }
  0x70   :  { %v152_v49 = vsel %vm150_vm3, %v326_v42, %v151_v45 }
  0x71   :  { %v156_v51 = vsel %vm149_vm4, %v152_v49, %v155_v46 }
  0x72   :  { %v157_v53 = vsel %vm146_vm5, nan, %v156_v51 }
  0x73   :  { %v159_v57 = vmul.f32 %v158_v54, %v157_v53 }
  0x74   :  { %v330_v55 = vpop.eup %329 }
  0x75   :  { %v332_v56 = vpop.eup %331  ;;  %v261_v58 = vxor.u32 2147483648, %v330_v55  ;;  %v271_v63 = vrot.slane %v159_v57, %v270_v59 }
  0x76   :  { %v258_v60 = vxor.u32 2147483648, %v332_v56 }
  0x77   :  { %v262_v3 = vsel %vm260_vm6, %v261_v58, %v332_v56  ;;  %v273_v10 = vmul.f32 %v271_v63, %v266_v1 }
  0x78   :  { %v259_v61 = vsel %vm257_vm7, %v330_v55, %v258_v60 }
  0x79   :  { %v263_v62 = vsel %vm256_vm8, %v259_v61, %v262_v3 }
  0x7a   :  { %v264_v0 = vsel %vm253_vm9, nan, %v263_v62 }
  0x7b   :  { %v265_v7 = vmul.f32 %v264_v0, %v158_v54 }
  0x7d   :  { %v279_v11 = vrot.slane %v265_v7, %v270_v59 }
  0x7f   :  { %v281_v12 = vmul.f32 %v279_v11, %v274_v8 }
  0x81   :  { %v282_v13 = vadd.f32 %v281_v12, %v273_v10 }
  0x83   :  { %283 = vst [vmem:[#allocation8] sm:$0xff] %v282_v13 }
  0x84   :  { %384 = shalt.err (!%p381_p0)
}
  0x85   :  { %293 = dma.vmem_to_hbm [thread:$0]  %s291_s4, 128, %s538_s5, [#allocation5]  }
  0x86   :  { %397 = dma.done.wait [#allocation5], 128  }
  0x87   :  { %398 = vsyncadd [#allocation5], 4294967168 }
  0x88   :  { %297 = vsyncpa [#allocation4], 1 }
  0x89   :  { %298 = vsyncpa [#allocation7], 1 }
  0x8a   :  { %299 = vsyncpa [#allocation5], 1 }

</bundles_post_ra>
